<compile_context>
chip_gen: v5e
topology: v5e:2x2
jax: 0.10.0
libtpu: 0.0.40
codegen_flags: <defaults>
</compile_context>

<pallas_src>
import jax
import jax.numpy as jnp
from jax.experimental import pallas as pl
from jax.experimental.pallas import tpu as pltpu


def _mtl_loss_kernel(sig_ref, losses_ref, out_ref):
    # sig_ref   : (1, N)  f32 VMEM -- per-task sigma parameters (grid-resident)
    # losses_ref: (TB, N) f32 VMEM -- per-instance per-task scalar losses
    # out_ref   : (TB, 1) f32 VMEM -- per-instance weighted loss
    e = jnp.exp(sig_ref[...])                                    # EUP, (1, N)
    denom = jnp.sum(e)                                           # XLU, scalar
    num = jnp.sum(losses_ref[...] * e, axis=-1, keepdims=True)   # VPU + XLU, (TB, 1)
    out_ref[...] = num / denom                                   # exact divide


def mtl_loss_pallas(sigmas, losses, *, tb=None):
    """sigmas: (1, N) f32; losses: (B, N) f32.  Returns (B,) f32 weighted losses."""
    B, N = losses.shape
    if tb is None:
        tb = min(512, pl.cdiv(B, 8) * 8)          # sublane-aligned batch tile
    b_pad = pl.cdiv(B, tb) * tb
    if b_pad != B:
        losses = jnp.pad(losses, ((0, b_pad - B), (0, 0)))

    out = pl.pallas_call(
        _mtl_loss_kernel,
        out_shape=jax.ShapeDtypeStruct((b_pad, 1), jnp.float32),
        grid=(b_pad // tb,),
        in_specs=[
            pl.BlockSpec((1, N), lambda b: (0, 0)),     # sigmas: same block every step
            pl.BlockSpec((tb, N), lambda b: (b, 0)),
        ],
        out_specs=pl.BlockSpec((tb, 1), lambda b: (b, 0)),
        compiler_params=pltpu.CompilerParams(
            dimension_semantics=("parallel",)),
        cost_estimate=pl.CostEstimate(
            flops=2 * b_pad * N + 2 * N,
            transcendentals=N,
            bytes_accessed=4 * (b_pad * N + N + b_pad)),
    )(sigmas, losses)
    return out[:B, 0]


class MTLLossJax:
    """JAX port of MTL_loss: softmax-over-sigmas weighted sum of task losses."""

    def __init__(self, loss_keys):
        self.keys = list(loss_keys)
        n = len(self.keys)
        # nn.Parameter(torch.ones(1) / len(keys)) per key -> value 1/n
        self.sigmas = jnp.full((1, n), 1.0 / n, dtype=jnp.float32)

    def losses_vector(self, loss_dict):
        # Absent keys contribute 0 (the original's `if k in lw` gate) -- no mask.
        return jnp.stack([
            jnp.asarray(loss_dict.get(k, 0.0), jnp.float32).reshape(())
            for k in self.keys])

    def __call__(self, loss_dict):
        losses = self.losses_vector(loss_dict)[None, :]          # (1, N)
        return mtl_loss_pallas(self.sigmas, losses)[0]           # scalar


def _reference(sigmas, losses_bn):
    e = jnp.exp(sigmas.reshape(-1))
    w = e / jnp.sum(e)
    return jnp.sum(losses_bn * w, axis=-1)


if __name__ == "__main__":
    key = jax.random.PRNGKey(0)
    task_names = ["ce", "dice", "contour", "consistency"]
    mtl = MTLLossJax(task_names)

    # --- single-instance path (matches the PyTorch forward) -----------------
    raw = jax.random.uniform(key, (len(task_names),), dtype=jnp.float32,
                             minval=0.1, maxval=2.0)
    present = ["ce", "dice", "consistency"]          # exercises absent-key path
    loss_dict = {k: raw[i] for i, k in enumerate(task_names) if k in present}

    out = jax.block_until_ready(mtl(loss_dict))

    losses_vec = jnp.array(
        [float(raw[i]) if k in present else 0.0
         for i, k in enumerate(task_names)], dtype=jnp.float32)
    ref = _reference(mtl.sigmas, losses_vec[None, :])[0]
    assert out.shape == ()
    assert jnp.allclose(out, ref, rtol=1e-6, atol=1e-6), (out, ref)

    # --- batched path: many instances amortize launch/DMA overhead ----------
    B = 24
    batch_losses = jax.random.uniform(jax.random.PRNGKey(1),
                                      (B, len(task_names)), dtype=jnp.float32,
                                      minval=0.1, maxval=2.0)
    out_b = jax.block_until_ready(
        mtl_loss_pallas(mtl.sigmas, batch_losses, tb=8))   # grid=(3,), parallel
    ref_b = _reference(mtl.sigmas, batch_losses)
    assert out_b.shape == (B,)
    assert jnp.allclose(out_b, ref_b, rtol=1e-6, atol=1e-6), (out_b, ref_b)

    print("KERNEL_OK")
</pallas_src>

<mosaic_0001>
module attributes {stable_mosaic.version = 11 : i64} {
  func.func @_mtl_loss_kernel(%arg0: i32, %arg1: memref<1x4xf32, #tpu.memory_space<vmem>>, %arg2: memref<8x4xf32, #tpu.memory_space<vmem>>, %arg3: memref<8x1xf32, #tpu.memory_space<vmem>>) attributes {dimension_semantics = [#tpu.dimension_semantics<parallel>], iteration_bounds = array<i64: 1>, scalar_prefetch = 0 : i64, scratch_operands = 0 : i64, tpu.core_type = #tpu.core_type<tc>, window_params = [{pipeline_mode = #tpu.pipeline_mode<synchronous>, transform_indices = @transform_0, window_bounds = array<i64: 1, 4>}, {transform_indices = @transform_1, window_bounds = array<i64: 8, 4>}, {transform_indices = @transform_2, window_bounds = array<i64: 8, 1>}]} {
    %c0 = arith.constant 0 : index
    %c0_0 = arith.constant 0 : index
    %0 = vector.load %arg1[%c0, %c0_0] : memref<1x4xf32, #tpu.memory_space<vmem>>, vector<1x4xf32>
    %1 = math.exp %0 : vector<1x4xf32>
    %2 = vector.shape_cast %1 : vector<1x4xf32> to vector<1x1x4xf32>
    %cst = arith.constant dense<0.000000e+00> : vector<1xf32>
    %3 = vector.multi_reduction <add>, %2, %cst [1, 2] : vector<1x1x4xf32> to vector<1xf32>
    %4 = vector.shape_cast %3 : vector<1xf32> to vector<1x1x1xf32>
    %5 = vector.extract %4[0, 0, 0] : f32 from vector<1x1x1xf32>
    %c0_1 = arith.constant 0 : index
    %c0_2 = arith.constant 0 : index
    %6 = vector.load %arg2[%c0_1, %c0_2] : memref<8x4xf32, #tpu.memory_space<vmem>>, vector<8x4xf32>
    %7 = vector.broadcast %1 : vector<1x4xf32> to vector<8x4xf32>
    %8 = arith.mulf %6, %7 : vector<8x4xf32>
    %cst_3 = arith.constant dense<0.000000e+00> : vector<8xf32>
    %9 = vector.multi_reduction <add>, %8, %cst_3 [1] : vector<8x4xf32> to vector<8xf32>
    %10 = vector.shape_cast %9 : vector<8xf32> to vector<8x1xf32>
    %11 = vector.broadcast %5 : f32 to vector<8x1xf32>
    %12 = arith.divf %10, %11 : vector<8x1xf32>
    %c0_4 = arith.constant 0 : index
    %c0_5 = arith.constant 0 : index
    %13 = vector.load %arg3[%c0_4, %c0_5] : memref<8x1xf32, #tpu.memory_space<vmem>>, vector<8x1xf32>
    tpu.vector_store %arg3[%c0_4, %c0_5], %12 {strides = array<i32>} : memref<8x1xf32, #tpu.memory_space<vmem>>, vector<8x1xf32>,
    return
  }
  func.func @transform_0(%arg0: i32) -> (i32, i32) {
    %c0_i32 = arith.constant 0 : i32
    %c0_i32_0 = arith.constant 0 : i32
    %c0_i32_1 = arith.constant 0 : i32
    return %c0_i32, %c0_i32_0 : i32, i32
  }
  func.func @transform_1(%arg0: i32) -> (i32, i32) {
    %c0_i32 = arith.constant 0 : i32
    %c0_i32_0 = arith.constant 0 : i32
    return %arg0, %c0_i32 : i32, i32
  }
  func.func @transform_2(%arg0: i32) -> (i32, i32) {
    %c0_i32 = arith.constant 0 : i32
    %c0_i32_0 = arith.constant 0 : i32
    return %arg0, %c0_i32 : i32, i32
  }
}

</mosaic_0001>

<bundles_post_ra>
// kernel: tpu_custom_call.1
= control target key start
LH: loop header
LB: loop body
LE: loop exit
PB: predicated region body
PF: predicated region fallthrough
CT: control target
= control target key end

     0   :  { %vm14_vm0 = vcmask 24576   ;;  %vm30_vm1 = vcmask 31744   ;;  %vm50_vm6 = vcmask 7168   ;;  %s86_s0 = inlined_call_operand.vmem [shape: f32[1,4], index: 0, kind: input, shape index: {}]   ;;  %s87_s1 = inlined_call_operand.vmem [shape: f32[8,4], index: 1, kind: input, shape index: {}]   ;;  %s88_s2 = inlined_call_operand.vmem [shape: f32[8,1], index: 2, kind: output, shape index: {}]  }
   0x1   :  { %v11_v0 = vld [vmem:[%s86_s0] sm:$0x1] }
   0x2   :  { %v12_v1 = vmul.f32 1.442695, %v11_v0  ;;  %v25_v3 = vld [vmem:[%s87_s1] sm:$0xff] }
   0x4   :  { %58 = vpow2.f32 %v12_v1 }
   0xa   :  { %v59_v2 = vpop.eup %58 }
   0xb   :  { %v15_v4 = vsel %vm14_vm0, %v59_v2, 0.0  ;;  %v27_v5 = vperm.slane %v59_v2, 0 }
   0xc   :  { %16 = vadd.xlane.f32.xlu0 %v15_v4 }
   0xd   :  { %v29_v6 = vmul.f32 %v27_v5, %v25_v3 }
   0xf   :  { %v31_v7 = vsel %vm30_vm1, %v29_v6, 0.0 }
  0x14   :  { %32 = vadd.xlane.f32.xlu0 %v31_v7 }
  0x7f   :  { %v17_v8 = vpop.xlane.xlu0 %16 }
  0x80   :  { %v18_v9 = vrot.slane %v17_v8, 4 }
  0x82   :  { %v19_v10 = vadd.f32 %v18_v9, %v17_v8 }
  0x84   :  { %v20_v11 = vrot.slane %v19_v10, 2 }
  0x86   :  { %v21_v12 = vadd.f32 %v20_v11, %v19_v10 }
  0x87   :  { %v33_v24 = vpop.xlane.xlu0 %32 }
  0x88   :  { %v22_v13 = vrot.slane %v21_v12, 1 }
  0x8a   :  { %v23_v14 = vadd.f32 %v22_v13, %v21_v12 }
  0x8c   :  { %56 = vpush %v23_v14 }
  0xbd   :  { %s57_s0 = spop %56 }
  0xbe   :  { %v34_v15 = vstv %s57_s0 }
  0xbf   :  { %60 = vrcp.f32 %v34_v15  ;;  %v46_v19 = vand.u32 2147483648, %v34_v15  ;;  %v44_v21 = vand.u32 2147483647, %v34_v15  ;;  %vm40_vm3 = vweird.f32 %v34_v15 }
  0xc1   :  { %v47_v23 = vor.u32 1.1754944e-38, %v46_v19  ;;  %vm45_vm5 = vcmp.eq.f32.partialorder %v44_v21, 8.507059e+37 }
  0xc5   :  { %v61_v16 = vpop.eup %60 }
  0xc6   :  { %v36_v17 = vmul.f32 %v61_v16, %v34_v15  ;;  %vm41_vm2 = vweird.f32 %v61_v16 }
  0xc7   :  { %vm42_vm4 = vmor %vm40_vm3, %vm41_vm2 }
  0xc8   :  { %v37_v18 = vsub.f32 1.0, %v36_v17 }
  0xca   :  { %v38_v20 = vmul.f32 %v61_v16, %v37_v18 }
  0xcc   :  { %v39_v22 = vadd.f32 %v61_v16, %v38_v20 }
  0xce   :  { %v43_v25 = vsel %vm42_vm4, %v61_v16, %v39_v22 }
  0xcf   :  { %v48_v26 = vsel %vm45_vm5, %v47_v23, %v43_v25 }
  0xd0   :  { %v49_v27 = vmul.f32 %v48_v26, %v33_v24 }
  0xd2   :  { %51 = vst.msk [vmem:[%s88_s2] sm:$0xff] %vm50_vm6, %v49_v27 }

</bundles_post_ra>
